<compile_context>
chip_gen: v7x
topology: tpu7x:2x2x1
jax: 0.10.0
libtpu: 0.0.40
codegen_flags: <defaults>
</compile_context>

<pallas_src>
import functools

import jax
import jax.numpy as jnp
import numpy as np
from jax.experimental import pallas as pl
from jax.experimental.pallas import tpu as pltpu


# ----------------------------------------------------------------------------
# Fused LightRB kernel: one grid step per batch element, activations (C, H*W).
# ----------------------------------------------------------------------------
def _light_rb_kernel(x_ref, masks_ref,
                     w1a_ref, b1a_ref, w3a_ref, b3a_ref,
                     w1bx_ref, w1bx1_ref, b1b_ref, w3b_ref, b3b_ref,
                     wrx_ref, wrx1_ref, wrx2_ref, br_ref,
                     o_ref, *, H, W):
    C = x_ref.shape[1]
    x = x_ref[0].astype(jnp.float32)              # (C, H*W), lanes = H*W
    masks = masks_ref[...]                        # (9, H*W) in {0., 1.}

    def mm(w, z):                                 # (Co, Ci) @ (Ci, H*W)
        return jnp.dot(w, z, preferred_element_type=jnp.float32)

    def conv3x3(y, w3_ref, b_ref):
        # 'same' 3x3 conv on the flattened (C, H*W) layout: each tap is a
        # lane roll of y with out-of-image lanes zeroed by a precomputed mask.
        taps = []
        t = 0
        for dy in (-1, 0, 1):
            for dx in (-1, 0, 1):
                shift = dy * W + dx
                shifted = y if shift == 0 else jnp.roll(y, -shift, axis=1)
                taps.append(shifted * masks[t:t + 1, :])
                t += 1
        if C % 8 == 0:
            # im2col: single MXU matmul with contraction K = 9*C.
            slab = jnp.concatenate(taps, axis=0)          # (9*C, H*W)
            out = mm(w3_ref[...], slab)
        else:
            # Small / sublane-unaligned C: accumulate nine K=C matmuls.
            out = mm(w3_ref[:, 0:C], taps[0])
            for k in range(1, 9):
                out = out + mm(w3_ref[:, k * C:(k + 1) * C], taps[k])
        return out + b_ref[...]

    # op1: 1x1 -> ReLU -> 3x3
    y1 = jnp.maximum(mm(w1a_ref[...], x) + b1a_ref[...], 0.0)
    x1 = conv3x3(y1, w3a_ref, b3a_ref)

    # op2: 1x1 on the implicit concat [x, x1] -> ReLU -> 3x3
    y2 = jnp.maximum(mm(w1bx_ref[...], x) + mm(w1bx1_ref[...], x1)
                     + b1b_ref[...], 0.0)
    x2 = conv3x3(y2, w3b_ref, b3b_ref)

    # reduce: 1x1 on the implicit concat [x, x1, x2] + bias + residual
    out = (mm(wrx_ref[...], x) + mm(wrx1_ref[...], x1) + mm(wrx2_ref[...], x2)
           + br_ref[...] + x)
    o_ref[0] = out.astype(o_ref.dtype)


def _tap_masks(H, W):
    """(9, H*W) {0,1} masks marking in-image taps ('same' zero padding)."""
    i = np.arange(H * W) // W
    j = np.arange(H * W) % W
    rows = []
    for dy in (-1, 0, 1):
        for dx in (-1, 0, 1):
            valid = ((i + dy >= 0) & (i + dy < H) &
                     (j + dx >= 0) & (j + dx < W))
            rows.append(valid.astype(np.float32))
    return jnp.asarray(np.stack(rows, axis=0))


# ----------------------------------------------------------------------------
# LightRB forward (NCHW in / NCHW out, matching the PyTorch module).
# ----------------------------------------------------------------------------
def light_rb_forward(x_nchw, params):
    N, C, H, W = x_nchw.shape
    HW = H * W
    x_flat = x_nchw.reshape(N, C, HW)     # trailing-dim collapse (layout free)
    masks = _tap_masks(H, W)

    # Tiny one-time weight re-layouts (outside the kernel).
    # 3x3 HWIO (3,3,Ci,Co) -> (Co, 9*Ci) with column index t*Ci + ci, t=ky*3+kx.
    w3a = jnp.transpose(params["w3a"], (3, 0, 1, 2)).reshape(C, 9 * C)
    w3b = jnp.transpose(params["w3b"], (3, 0, 1, 2)).reshape(C, 9 * C)
    w1bx, w1bx1 = params["w1b"][:, :C], params["w1b"][:, C:]
    wrx, wrx1, wrx2 = (params["wr"][:, :C], params["wr"][:, C:2 * C],
                       params["wr"][:, 2 * C:])
    col = lambda b: b.reshape(C, 1)

    def full(*shape):
        return pl.BlockSpec(shape, lambda n: (0,) * len(shape))

    act_spec = pl.BlockSpec((1, C, HW), lambda n: (n, 0, 0))

    out_flat = pl.pallas_call(
        functools.partial(_light_rb_kernel, H=H, W=W),
        out_shape=jax.ShapeDtypeStruct((N, C, HW), x_nchw.dtype),
        grid=(N,),
        in_specs=[
            act_spec,                                  # x
            full(9, HW),                               # boundary masks
            full(C, C), full(C, 1),                    # conv1x1_a (w, b)
            full(C, 9 * C), full(C, 1),                # conv3x3_a (w, b)
            full(C, C), full(C, C), full(C, 1),        # conv1x1_b split (wx, wx1, b)
            full(C, 9 * C), full(C, 1),                # conv3x3_b (w, b)
            full(C, C), full(C, C), full(C, C), full(C, 1),  # reduce split + b
        ],
        out_specs=act_spec,
        compiler_params=pltpu.CompilerParams(
            dimension_semantics=("parallel",),
            vmem_limit_bytes=48 * 1024 * 1024),
    )(x_flat, masks,
      params["w1a"], col(params["b1a"]), w3a, col(params["b3a"]),
      w1bx, w1bx1, col(params["b1b"]), w3b, col(params["b3b"]),
      wrx, wrx1, wrx2, col(params["br"]))
    return out_flat.reshape(N, C, H, W)


# ----------------------------------------------------------------------------
# Pure-JAX reference for the correctness check.
# ----------------------------------------------------------------------------
def light_rb_reference(x_nchw, params):
    hp = jax.lax.Precision.HIGHEST
    x = jnp.transpose(x_nchw, (0, 2, 3, 1))                    # NHWC

    def c1(z, w_oi, b):
        return (jnp.einsum("nhwi,oi->nhwo", z, w_oi, precision=hp)
                + b.reshape(1, 1, 1, -1))

    def c3(z, w_hwio, b):
        out = jax.lax.conv_general_dilated(
            z, w_hwio, (1, 1), "SAME",
            dimension_numbers=("NHWC", "HWIO", "NHWC"), precision=hp)
        return out + b.reshape(1, 1, 1, -1)

    y1 = jax.nn.relu(c1(x, params["w1a"], params["b1a"]))
    x1 = c3(y1, params["w3a"], params["b3a"])
    y2 = jax.nn.relu(c1(jnp.concatenate([x, x1], -1),
                        params["w1b"], params["b1b"]))
    x2 = c3(y2, params["w3b"], params["b3b"])
    red = c1(jnp.concatenate([x, x1, x2], -1), params["wr"], params["br"])
    return jnp.transpose(red + x, (0, 3, 1, 2))


if __name__ == "__main__":
    N, C, H, W = 2, 4, 16, 16
    key = jax.random.PRNGKey(0)
    ks = jax.random.split(key, 11)

    params = {
        "w1a": 0.1 * jax.random.normal(ks[0], (C, C), jnp.float32),
        "b1a": 0.1 * jax.random.normal(ks[1], (C,), jnp.float32),
        "w3a": 0.1 * jax.random.normal(ks[2], (3, 3, C, C), jnp.float32),
        "b3a": 0.1 * jax.random.normal(ks[3], (C,), jnp.float32),
        "w1b": 0.1 * jax.random.normal(ks[4], (C, 2 * C), jnp.float32),
        "b1b": 0.1 * jax.random.normal(ks[5], (C,), jnp.float32),
        "w3b": 0.1 * jax.random.normal(ks[6], (3, 3, C, C), jnp.float32),
        "b3b": 0.1 * jax.random.normal(ks[7], (C,), jnp.float32),
        "wr": 0.1 * jax.random.normal(ks[8], (C, 3 * C), jnp.float32),
        "br": 0.1 * jax.random.normal(ks[9], (C,), jnp.float32),
    }
    x = jax.random.normal(ks[10], (N, C, H, W), jnp.float32)

    out = jax.block_until_ready(jax.jit(light_rb_forward)(x, params))
    ref = jax.block_until_ready(light_rb_reference(x, params))

    assert out.shape == (N, C, H, W), out.shape
    np.testing.assert_allclose(np.asarray(out), np.asarray(ref),
                               rtol=1e-4, atol=1e-4)
    print("KERNEL_OK")
</pallas_src>

<mosaic_0001>
module attributes {stable_mosaic.version = 11 : i64} {
  func.func @_light_rb_kernel(%arg0: i32, %arg1: memref<1x4x256xf32, #tpu.memory_space<vmem>>, %arg2: memref<9x256xf32, #tpu.memory_space<vmem>>, %arg3: memref<4x4xf32, #tpu.memory_space<vmem>>, %arg4: memref<4x1xf32, #tpu.memory_space<vmem>>, %arg5: memref<4x36xf32, #tpu.memory_space<vmem>>, %arg6: memref<4x1xf32, #tpu.memory_space<vmem>>, %arg7: memref<4x4xf32, #tpu.memory_space<vmem>>, %arg8: memref<4x4xf32, #tpu.memory_space<vmem>>, %arg9: memref<4x1xf32, #tpu.memory_space<vmem>>, %arg10: memref<4x36xf32, #tpu.memory_space<vmem>>, %arg11: memref<4x1xf32, #tpu.memory_space<vmem>>, %arg12: memref<4x4xf32, #tpu.memory_space<vmem>>, %arg13: memref<4x4xf32, #tpu.memory_space<vmem>>, %arg14: memref<4x4xf32, #tpu.memory_space<vmem>>, %arg15: memref<4x1xf32, #tpu.memory_space<vmem>>, %arg16: memref<1x4x256xf32, #tpu.memory_space<vmem>>) attributes {dimension_semantics = [#tpu.dimension_semantics<parallel>], iteration_bounds = array<i64: 2>, scalar_prefetch = 0 : i64, scratch_operands = 0 : i64, tpu.core_type = #tpu.core_type<tc>, window_params = [{transform_indices = @transform_0, window_bounds = array<i64: 1, 4, 256>}, {pipeline_mode = #tpu.pipeline_mode<synchronous>, transform_indices = @transform_1, window_bounds = array<i64: 9, 256>}, {pipeline_mode = #tpu.pipeline_mode<synchronous>, transform_indices = @transform_2, window_bounds = array<i64: 4, 4>}, {pipeline_mode = #tpu.pipeline_mode<synchronous>, transform_indices = @transform_3, window_bounds = array<i64: 4, 1>}, {pipeline_mode = #tpu.pipeline_mode<synchronous>, transform_indices = @transform_4, window_bounds = array<i64: 4, 36>}, {pipeline_mode = #tpu.pipeline_mode<synchronous>, transform_indices = @transform_5, window_bounds = array<i64: 4, 1>}, {pipeline_mode = #tpu.pipeline_mode<synchronous>, transform_indices = @transform_6, window_bounds = array<i64: 4, 4>}, {pipeline_mode = #tpu.pipeline_mode<synchronous>, transform_indices = @transform_7, window_bounds = array<i64: 4, 4>}, {pipeline_mode = #tpu.pipeline_mode<synchronous>, transform_indices = @transform_8, window_bounds = array<i64: 4, 1>}, {pipeline_mode = #tpu.pipeline_mode<synchronous>, transform_indices = @transform_9, window_bounds = array<i64: 4, 36>}, {pipeline_mode = #tpu.pipeline_mode<synchronous>, transform_indices = @transform_10, window_bounds = array<i64: 4, 1>}, {pipeline_mode = #tpu.pipeline_mode<synchronous>, transform_indices = @transform_11, window_bounds = array<i64: 4, 4>}, {pipeline_mode = #tpu.pipeline_mode<synchronous>, transform_indices = @transform_12, window_bounds = array<i64: 4, 4>}, {pipeline_mode = #tpu.pipeline_mode<synchronous>, transform_indices = @transform_13, window_bounds = array<i64: 4, 4>}, {pipeline_mode = #tpu.pipeline_mode<synchronous>, transform_indices = @transform_14, window_bounds = array<i64: 4, 1>}, {transform_indices = @transform_15, window_bounds = array<i64: 1, 4, 256>}]} {
    %c0 = arith.constant 0 : index
    %c0_0 = arith.constant 0 : index
    %c0_1 = arith.constant 0 : index
    %0 = vector.load %arg1[%c0, %c0_0, %c0_1] : memref<1x4x256xf32, #tpu.memory_space<vmem>>, vector<1x4x256xf32>
    %1 = vector.shape_cast %0 : vector<1x4x256xf32> to vector<4x256xf32>
    %c0_2 = arith.constant 0 : index
    %c0_3 = arith.constant 0 : index
    %2 = vector.load %arg2[%c0_2, %c0_3] : memref<9x256xf32, #tpu.memory_space<vmem>>, vector<9x256xf32>
    %c0_4 = arith.constant 0 : index
    %c0_5 = arith.constant 0 : index
    %3 = vector.load %arg3[%c0_4, %c0_5] : memref<4x4xf32, #tpu.memory_space<vmem>>, vector<4x4xf32>
    %cst = arith.constant dense<0.000000e+00> : vector<4x256xf32>
    %4 = tpu.matmul %3, %1, %cst {dimension_numbers = #tpu.dot_dimension_numbers<[1], [0], [0], [1], [0, 0, 1, 1], [], []>} : vector<4x4xf32>, vector<4x256xf32>, vector<4x256xf32> -> vector<4x256xf32>
    %c0_6 = arith.constant 0 : index
    %c0_7 = arith.constant 0 : index
    %5 = vector.load %arg4[%c0_6, %c0_7] : memref<4x1xf32, #tpu.memory_space<vmem>>, vector<4x1xf32>
    %6 = vector.broadcast %5 : vector<4x1xf32> to vector<4x256xf32>
    %7 = arith.addf %4, %6 : vector<4x256xf32>
    %cst_8 = arith.constant 0.000000e+00 : f32
    %8 = vector.broadcast %cst_8 : f32 to vector<4x256xf32>
    %9 = arith.maximumf %7, %8 : vector<4x256xf32>
    %10 = vector.extract_strided_slice %9 {offsets = [0, 239], sizes = [4, 17], strides = [1, 1]} : vector<4x256xf32> to vector<4x17xf32>
    %11 = vector.extract_strided_slice %9 {offsets = [0, 0], sizes = [4, 239], strides = [1, 1]} : vector<4x256xf32> to vector<4x239xf32>
    %12 = tpu.concatenate %10, %11 in 1 : vector<4x17xf32>, vector<4x239xf32> -> vector<4x256xf32>
    %13 = vector.extract_strided_slice %2 {offsets = [0, 0], sizes = [1, 256], strides = [1, 1]} : vector<9x256xf32> to vector<1x256xf32>
    %14 = vector.broadcast %13 : vector<1x256xf32> to vector<4x256xf32>
    %15 = arith.mulf %12, %14 : vector<4x256xf32>
    %16 = vector.extract_strided_slice %9 {offsets = [0, 240], sizes = [4, 16], strides = [1, 1]} : vector<4x256xf32> to vector<4x16xf32>
    %17 = vector.extract_strided_slice %9 {offsets = [0, 0], sizes = [4, 240], strides = [1, 1]} : vector<4x256xf32> to vector<4x240xf32>
    %18 = tpu.concatenate %16, %17 in 1 : vector<4x16xf32>, vector<4x240xf32> -> vector<4x256xf32>
    %19 = vector.extract_strided_slice %2 {offsets = [1, 0], sizes = [1, 256], strides = [1, 1]} : vector<9x256xf32> to vector<1x256xf32>
    %20 = vector.broadcast %19 : vector<1x256xf32> to vector<4x256xf32>
    %21 = arith.mulf %18, %20 : vector<4x256xf32>
    %22 = vector.extract_strided_slice %9 {offsets = [0, 241], sizes = [4, 15], strides = [1, 1]} : vector<4x256xf32> to vector<4x15xf32>
    %23 = vector.extract_strided_slice %9 {offsets = [0, 0], sizes = [4, 241], strides = [1, 1]} : vector<4x256xf32> to vector<4x241xf32>
    %24 = tpu.concatenate %22, %23 in 1 : vector<4x15xf32>, vector<4x241xf32> -> vector<4x256xf32>
    %25 = vector.extract_strided_slice %2 {offsets = [2, 0], sizes = [1, 256], strides = [1, 1]} : vector<9x256xf32> to vector<1x256xf32>
    %26 = vector.broadcast %25 : vector<1x256xf32> to vector<4x256xf32>
    %27 = arith.mulf %24, %26 : vector<4x256xf32>
    %28 = vector.extract_strided_slice %9 {offsets = [0, 255], sizes = [4, 1], strides = [1, 1]} : vector<4x256xf32> to vector<4x1xf32>
    %29 = vector.extract_strided_slice %9 {offsets = [0, 0], sizes = [4, 255], strides = [1, 1]} : vector<4x256xf32> to vector<4x255xf32>
    %30 = tpu.concatenate %28, %29 in 1 : vector<4x1xf32>, vector<4x255xf32> -> vector<4x256xf32>
    %31 = vector.extract_strided_slice %2 {offsets = [3, 0], sizes = [1, 256], strides = [1, 1]} : vector<9x256xf32> to vector<1x256xf32>
    %32 = vector.broadcast %31 : vector<1x256xf32> to vector<4x256xf32>
    %33 = arith.mulf %30, %32 : vector<4x256xf32>
    %34 = vector.extract_strided_slice %2 {offsets = [4, 0], sizes = [1, 256], strides = [1, 1]} : vector<9x256xf32> to vector<1x256xf32>
    %35 = vector.broadcast %34 : vector<1x256xf32> to vector<4x256xf32>
    %36 = arith.mulf %9, %35 : vector<4x256xf32>
    %37 = vector.extract_strided_slice %9 {offsets = [0, 1], sizes = [4, 255], strides = [1, 1]} : vector<4x256xf32> to vector<4x255xf32>
    %38 = vector.extract_strided_slice %9 {offsets = [0, 0], sizes = [4, 1], strides = [1, 1]} : vector<4x256xf32> to vector<4x1xf32>
    %39 = tpu.concatenate %37, %38 in 1 : vector<4x255xf32>, vector<4x1xf32> -> vector<4x256xf32>
    %40 = vector.extract_strided_slice %2 {offsets = [5, 0], sizes = [1, 256], strides = [1, 1]} : vector<9x256xf32> to vector<1x256xf32>
    %41 = vector.broadcast %40 : vector<1x256xf32> to vector<4x256xf32>
    %42 = arith.mulf %39, %41 : vector<4x256xf32>
    %43 = vector.extract_strided_slice %9 {offsets = [0, 15], sizes = [4, 241], strides = [1, 1]} : vector<4x256xf32> to vector<4x241xf32>
    %44 = vector.extract_strided_slice %9 {offsets = [0, 0], sizes = [4, 15], strides = [1, 1]} : vector<4x256xf32> to vector<4x15xf32>
    %45 = tpu.concatenate %43, %44 in 1 : vector<4x241xf32>, vector<4x15xf32> -> vector<4x256xf32>
    %46 = vector.extract_strided_slice %2 {offsets = [6, 0], sizes = [1, 256], strides = [1, 1]} : vector<9x256xf32> to vector<1x256xf32>
    %47 = vector.broadcast %46 : vector<1x256xf32> to vector<4x256xf32>
    %48 = arith.mulf %45, %47 : vector<4x256xf32>
    %49 = vector.extract_strided_slice %9 {offsets = [0, 16], sizes = [4, 240], strides = [1, 1]} : vector<4x256xf32> to vector<4x240xf32>
    %50 = vector.extract_strided_slice %9 {offsets = [0, 0], sizes = [4, 16], strides = [1, 1]} : vector<4x256xf32> to vector<4x16xf32>
    %51 = tpu.concatenate %49, %50 in 1 : vector<4x240xf32>, vector<4x16xf32> -> vector<4x256xf32>
    %52 = vector.extract_strided_slice %2 {offsets = [7, 0], sizes = [1, 256], strides = [1, 1]} : vector<9x256xf32> to vector<1x256xf32>
    %53 = vector.broadcast %52 : vector<1x256xf32> to vector<4x256xf32>
    %54 = arith.mulf %51, %53 : vector<4x256xf32>
    %55 = vector.extract_strided_slice %9 {offsets = [0, 17], sizes = [4, 239], strides = [1, 1]} : vector<4x256xf32> to vector<4x239xf32>
    %56 = vector.extract_strided_slice %9 {offsets = [0, 0], sizes = [4, 17], strides = [1, 1]} : vector<4x256xf32> to vector<4x17xf32>
    %57 = tpu.concatenate %55, %56 in 1 : vector<4x239xf32>, vector<4x17xf32> -> vector<4x256xf32>
    %58 = vector.extract_strided_slice %2 {offsets = [8, 0], sizes = [1, 256], strides = [1, 1]} : vector<9x256xf32> to vector<1x256xf32>
    %59 = vector.broadcast %58 : vector<1x256xf32> to vector<4x256xf32>
    %60 = arith.mulf %57, %59 : vector<4x256xf32>
    %c0_9 = arith.constant 0 : index
    %c0_10 = arith.constant 0 : index
    %61 = vector.load %arg5[%c0_9, %c0_10] : memref<4x36xf32, #tpu.memory_space<vmem>>, vector<4x4xf32>
    %cst_11 = arith.constant dense<0.000000e+00> : vector<4x256xf32>
    %62 = tpu.matmul %61, %15, %cst_11 {dimension_numbers = #tpu.dot_dimension_numbers<[1], [0], [0], [1], [0, 0, 1, 1], [], []>} : vector<4x4xf32>, vector<4x256xf32>, vector<4x256xf32> -> vector<4x256xf32>
    %c0_12 = arith.constant 0 : index
    %c4 = arith.constant 4 : index
    %63 = vector.load %arg5[%c0_12, %c4] : memref<4x36xf32, #tpu.memory_space<vmem>>, vector<4x4xf32>
    %cst_13 = arith.constant dense<0.000000e+00> : vector<4x256xf32>
    %64 = tpu.matmul %63, %21, %cst_13 {dimension_numbers = #tpu.dot_dimension_numbers<[1], [0], [0], [1], [0, 0, 1, 1], [], []>} : vector<4x4xf32>, vector<4x256xf32>, vector<4x256xf32> -> vector<4x256xf32>
    %65 = arith.addf %62, %64 : vector<4x256xf32>
    %c0_14 = arith.constant 0 : index
    %c8 = arith.constant 8 : index
    %66 = vector.load %arg5[%c0_14, %c8] : memref<4x36xf32, #tpu.memory_space<vmem>>, vector<4x4xf32>
    %cst_15 = arith.constant dense<0.000000e+00> : vector<4x256xf32>
    %67 = tpu.matmul %66, %27, %cst_15 {dimension_numbers = #tpu.dot_dimension_numbers<[1], [0], [0], [1], [0, 0, 1, 1], [], []>} : vector<4x4xf32>, vector<4x256xf32>, vector<4x256xf32> -> vector<4x256xf32>
    %68 = arith.addf %65, %67 : vector<4x256xf32>
    %c0_16 = arith.constant 0 : index
    %c12 = arith.constant 12 : index
    %69 = vector.load %arg5[%c0_16, %c12] : memref<4x36xf32, #tpu.memory_space<vmem>>, vector<4x4xf32>
    %cst_17 = arith.constant dense<0.000000e+00> : vector<4x256xf32>
    %70 = tpu.matmul %69, %33, %cst_17 {dimension_numbers = #tpu.dot_dimension_numbers<[1], [0], [0], [1], [0, 0, 1, 1], [], []>} : vector<4x4xf32>, vector<4x256xf32>, vector<4x256xf32> -> vector<4x256xf32>
    %71 = arith.addf %68, %70 : vector<4x256xf32>
    %c0_18 = arith.constant 0 : index
    %c16 = arith.constant 16 : index
    %72 = vector.load %arg5[%c0_18, %c16] : memref<4x36xf32, #tpu.memory_space<vmem>>, vector<4x4xf32>
    %cst_19 = arith.constant dense<0.000000e+00> : vector<4x256xf32>
    %73 = tpu.matmul %72, %36, %cst_19 {dimension_numbers = #tpu.dot_dimension_numbers<[1], [0], [0], [1], [0, 0, 1, 1], [], []>} : vector<4x4xf32>, vector<4x256xf32>, vector<4x256xf32> -> vector<4x256xf32>
    %74 = arith.addf %71, %73 : vector<4x256xf32>
    %c0_20 = arith.constant 0 : index
    %c20 = arith.constant 20 : index
    %75 = vector.load %arg5[%c0_20, %c20] : memref<4x36xf32, #tpu.memory_space<vmem>>, vector<4x4xf32>
    %cst_21 = arith.constant dense<0.000000e+00> : vector<4x256xf32>
    %76 = tpu.matmul %75, %42, %cst_21 {dimension_numbers = #tpu.dot_dimension_numbers<[1], [0], [0], [1], [0, 0, 1, 1], [], []>} : vector<4x4xf32>, vector<4x256xf32>, vector<4x256xf32> -> vector<4x256xf32>
    %77 = arith.addf %74, %76 : vector<4x256xf32>
    %c0_22 = arith.constant 0 : index
    %c24 = arith.constant 24 : index
    %78 = vector.load %arg5[%c0_22, %c24] : memref<4x36xf32, #tpu.memory_space<vmem>>, vector<4x4xf32>
    %cst_23 = arith.constant dense<0.000000e+00> : vector<4x256xf32>
    %79 = tpu.matmul %78, %48, %cst_23 {dimension_numbers = #tpu.dot_dimension_numbers<[1], [0], [0], [1], [0, 0, 1, 1], [], []>} : vector<4x4xf32>, vector<4x256xf32>, vector<4x256xf32> -> vector<4x256xf32>
    %80 = arith.addf %77, %79 : vector<4x256xf32>
    %c0_24 = arith.constant 0 : index
    %c28 = arith.constant 28 : index
    %81 = vector.load %arg5[%c0_24, %c28] : memref<4x36xf32, #tpu.memory_space<vmem>>, vector<4x4xf32>
    %cst_25 = arith.constant dense<0.000000e+00> : vector<4x256xf32>
    %82 = tpu.matmul %81, %54, %cst_25 {dimension_numbers = #tpu.dot_dimension_numbers<[1], [0], [0], [1], [0, 0, 1, 1], [], []>} : vector<4x4xf32>, vector<4x256xf32>, vector<4x256xf32> -> vector<4x256xf32>
    %83 = arith.addf %80, %82 : vector<4x256xf32>
    %c0_26 = arith.constant 0 : index
    %c32 = arith.constant 32 : index
    %84 = vector.load %arg5[%c0_26, %c32] : memref<4x36xf32, #tpu.memory_space<vmem>>, vector<4x4xf32>
    %cst_27 = arith.constant dense<0.000000e+00> : vector<4x256xf32>
    %85 = tpu.matmul %84, %60, %cst_27 {dimension_numbers = #tpu.dot_dimension_numbers<[1], [0], [0], [1], [0, 0, 1, 1], [], []>} : vector<4x4xf32>, vector<4x256xf32>, vector<4x256xf32> -> vector<4x256xf32>
    %86 = arith.addf %83, %85 : vector<4x256xf32>
    %c0_28 = arith.constant 0 : index
    %c0_29 = arith.constant 0 : index
    %87 = vector.load %arg6[%c0_28, %c0_29] : memref<4x1xf32, #tpu.memory_space<vmem>>, vector<4x1xf32>
    %88 = vector.broadcast %87 : vector<4x1xf32> to vector<4x256xf32>
    %89 = arith.addf %86, %88 : vector<4x256xf32>
    %c0_30 = arith.constant 0 : index
    %c0_31 = arith.constant 0 : index
    %90 = vector.load %arg7[%c0_30, %c0_31] : memref<4x4xf32, #tpu.memory_space<vmem>>, vector<4x4xf32>
    %cst_32 = arith.constant dense<0.000000e+00> : vector<4x256xf32>
    %91 = tpu.matmul %90, %1, %cst_32 {dimension_numbers = #tpu.dot_dimension_numbers<[1], [0], [0], [1], [0, 0, 1, 1], [], []>} : vector<4x4xf32>, vector<4x256xf32>, vector<4x256xf32> -> vector<4x256xf32>
    %c0_33 = arith.constant 0 : index
    %c0_34 = arith.constant 0 : index
    %92 = vector.load %arg8[%c0_33, %c0_34] : memref<4x4xf32, #tpu.memory_space<vmem>>, vector<4x4xf32>
    %cst_35 = arith.constant dense<0.000000e+00> : vector<4x256xf32>
    %93 = tpu.matmul %92, %89, %cst_35 {dimension_numbers = #tpu.dot_dimension_numbers<[1], [0], [0], [1], [0, 0, 1, 1], [], []>} : vector<4x4xf32>, vector<4x256xf32>, vector<4x256xf32> -> vector<4x256xf32>
    %94 = arith.addf %91, %93 : vector<4x256xf32>
    %c0_36 = arith.constant 0 : index
    %c0_37 = arith.constant 0 : index
    %95 = vector.load %arg9[%c0_36, %c0_37] : memref<4x1xf32, #tpu.memory_space<vmem>>, vector<4x1xf32>
    %96 = vector.broadcast %95 : vector<4x1xf32> to vector<4x256xf32>
    %97 = arith.addf %94, %96 : vector<4x256xf32>
    %cst_38 = arith.constant 0.000000e+00 : f32
    %98 = vector.broadcast %cst_38 : f32 to vector<4x256xf32>
    %99 = arith.maximumf %97, %98 : vector<4x256xf32>
    %100 = vector.extract_strided_slice %99 {offsets = [0, 239], sizes = [4, 17], strides = [1, 1]} : vector<4x256xf32> to vector<4x17xf32>
    %101 = vector.extract_strided_slice %99 {offsets = [0, 0], sizes = [4, 239], strides = [1, 1]} : vector<4x256xf32> to vector<4x239xf32>
    %102 = tpu.concatenate %100, %101 in 1 : vector<4x17xf32>, vector<4x239xf32> -> vector<4x256xf32>
    %103 = vector.extract_strided_slice %2 {offsets = [0, 0], sizes = [1, 256], strides = [1, 1]} : vector<9x256xf32> to vector<1x256xf32>
    %104 = vector.broadcast %103 : vector<1x256xf32> to vector<4x256xf32>
    %105 = arith.mulf %102, %104 : vector<4x256xf32>
    %106 = vector.extract_strided_slice %99 {offsets = [0, 240], sizes = [4, 16], strides = [1, 1]} : vector<4x256xf32> to vector<4x16xf32>
    %107 = vector.extract_strided_slice %99 {offsets = [0, 0], sizes = [4, 240], strides = [1, 1]} : vector<4x256xf32> to vector<4x240xf32>
    %108 = tpu.concatenate %106, %107 in 1 : vector<4x16xf32>, vector<4x240xf32> -> vector<4x256xf32>
    %109 = vector.extract_strided_slice %2 {offsets = [1, 0], sizes = [1, 256], strides = [1, 1]} : vector<9x256xf32> to vector<1x256xf32>
    %110 = vector.broadcast %109 : vector<1x256xf32> to vector<4x256xf32>
    %111 = arith.mulf %108, %110 : vector<4x256xf32>
    %112 = vector.extract_strided_slice %99 {offsets = [0, 241], sizes = [4, 15], strides = [1, 1]} : vector<4x256xf32> to vector<4x15xf32>
    %113 = vector.extract_strided_slice %99 {offsets = [0, 0], sizes = [4, 241], strides = [1, 1]} : vector<4x256xf32> to vector<4x241xf32>
    %114 = tpu.concatenate %112, %113 in 1 : vector<4x15xf32>, vector<4x241xf32> -> vector<4x256xf32>
    %115 = vector.extract_strided_slice %2 {offsets = [2, 0], sizes = [1, 256], strides = [1, 1]} : vector<9x256xf32> to vector<1x256xf32>
    %116 = vector.broadcast %115 : vector<1x256xf32> to vector<4x256xf32>
    %117 = arith.mulf %114, %116 : vector<4x256xf32>
    %118 = vector.extract_strided_slice %99 {offsets = [0, 255], sizes = [4, 1], strides = [1, 1]} : vector<4x256xf32> to vector<4x1xf32>
    %119 = vector.extract_strided_slice %99 {offsets = [0, 0], sizes = [4, 255], strides = [1, 1]} : vector<4x256xf32> to vector<4x255xf32>
    %120 = tpu.concatenate %118, %119 in 1 : vector<4x1xf32>, vector<4x255xf32> -> vector<4x256xf32>
    %121 = vector.extract_strided_slice %2 {offsets = [3, 0], sizes = [1, 256], strides = [1, 1]} : vector<9x256xf32> to vector<1x256xf32>
    %122 = vector.broadcast %121 : vector<1x256xf32> to vector<4x256xf32>
    %123 = arith.mulf %120, %122 : vector<4x256xf32>
    %124 = vector.extract_strided_slice %2 {offsets = [4, 0], sizes = [1, 256], strides = [1, 1]} : vector<9x256xf32> to vector<1x256xf32>
    %125 = vector.broadcast %124 : vector<1x256xf32> to vector<4x256xf32>
    %126 = arith.mulf %99, %125 : vector<4x256xf32>
    %127 = vector.extract_strided_slice %99 {offsets = [0, 1], sizes = [4, 255], strides = [1, 1]} : vector<4x256xf32> to vector<4x255xf32>
    %128 = vector.extract_strided_slice %99 {offsets = [0, 0], sizes = [4, 1], strides = [1, 1]} : vector<4x256xf32> to vector<4x1xf32>
    %129 = tpu.concatenate %127, %128 in 1 : vector<4x255xf32>, vector<4x1xf32> -> vector<4x256xf32>
    %130 = vector.extract_strided_slice %2 {offsets = [5, 0], sizes = [1, 256], strides = [1, 1]} : vector<9x256xf32> to vector<1x256xf32>
    %131 = vector.broadcast %130 : vector<1x256xf32> to vector<4x256xf32>
    %132 = arith.mulf %129, %131 : vector<4x256xf32>
    %133 = vector.extract_strided_slice %99 {offsets = [0, 15], sizes = [4, 241], strides = [1, 1]} : vector<4x256xf32> to vector<4x241xf32>
    %134 = vector.extract_strided_slice %99 {offsets = [0, 0], sizes = [4, 15], strides = [1, 1]} : vector<4x256xf32> to vector<4x15xf32>
    %135 = tpu.concatenate %133, %134 in 1 : vector<4x241xf32>, vector<4x15xf32> -> vector<4x256xf32>
    %136 = vector.extract_strided_slice %2 {offsets = [6, 0], sizes = [1, 256], strides = [1, 1]} : vector<9x256xf32> to vector<1x256xf32>
    %137 = vector.broadcast %136 : vector<1x256xf32> to vector<4x256xf32>
    %138 = arith.mulf %135, %137 : vector<4x256xf32>
    %139 = vector.extract_strided_slice %99 {offsets = [0, 16], sizes = [4, 240], strides = [1, 1]} : vector<4x256xf32> to vector<4x240xf32>
    %140 = vector.extract_strided_slice %99 {offsets = [0, 0], sizes = [4, 16], strides = [1, 1]} : vector<4x256xf32> to vector<4x16xf32>
    %141 = tpu.concatenate %139, %140 in 1 : vector<4x240xf32>, vector<4x16xf32> -> vector<4x256xf32>
    %142 = vector.extract_strided_slice %2 {offsets = [7, 0], sizes = [1, 256], strides = [1, 1]} : vector<9x256xf32> to vector<1x256xf32>
    %143 = vector.broadcast %142 : vector<1x256xf32> to vector<4x256xf32>
    %144 = arith.mulf %141, %143 : vector<4x256xf32>
    %145 = vector.extract_strided_slice %99 {offsets = [0, 17], sizes = [4, 239], strides = [1, 1]} : vector<4x256xf32> to vector<4x239xf32>
    %146 = vector.extract_strided_slice %99 {offsets = [0, 0], sizes = [4, 17], strides = [1, 1]} : vector<4x256xf32> to vector<4x17xf32>
    %147 = tpu.concatenate %145, %146 in 1 : vector<4x239xf32>, vector<4x17xf32> -> vector<4x256xf32>
    %148 = vector.extract_strided_slice %2 {offsets = [8, 0], sizes = [1, 256], strides = [1, 1]} : vector<9x256xf32> to vector<1x256xf32>
    %149 = vector.broadcast %148 : vector<1x256xf32> to vector<4x256xf32>
    %150 = arith.mulf %147, %149 : vector<4x256xf32>
    %c0_39 = arith.constant 0 : index
    %c0_40 = arith.constant 0 : index
    %151 = vector.load %arg10[%c0_39, %c0_40] : memref<4x36xf32, #tpu.memory_space<vmem>>, vector<4x4xf32>
    %cst_41 = arith.constant dense<0.000000e+00> : vector<4x256xf32>
    %152 = tpu.matmul %151, %105, %cst_41 {dimension_numbers = #tpu.dot_dimension_numbers<[1], [0], [0], [1], [0, 0, 1, 1], [], []>} : vector<4x4xf32>, vector<4x256xf32>, vector<4x256xf32> -> vector<4x256xf32>
    %c0_42 = arith.constant 0 : index
    %c4_43 = arith.constant 4 : index
    %153 = vector.load %arg10[%c0_42, %c4_43] : memref<4x36xf32, #tpu.memory_space<vmem>>, vector<4x4xf32>
    %cst_44 = arith.constant dense<0.000000e+00> : vector<4x256xf32>
    %154 = tpu.matmul %153, %111, %cst_44 {dimension_numbers = #tpu.dot_dimension_numbers<[1], [0], [0], [1], [0, 0, 1, 1], [], []>} : vector<4x4xf32>, vector<4x256xf32>, vector<4x256xf32> -> vector<4x256xf32>
    %155 = arith.addf %152, %154 : vector<4x256xf32>
    %c0_45 = arith.constant 0 : index
    %c8_46 = arith.constant 8 : index
    %156 = vector.load %arg10[%c0_45, %c8_46] : memref<4x36xf32, #tpu.memory_space<vmem>>, vector<4x4xf32>
    %cst_47 = arith.constant dense<0.000000e+00> : vector<4x256xf32>
    %157 = tpu.matmul %156, %117, %cst_47 {dimension_numbers = #tpu.dot_dimension_numbers<[1], [0], [0], [1], [0, 0, 1, 1], [], []>} : vector<4x4xf32>, vector<4x256xf32>, vector<4x256xf32> -> vector<4x256xf32>
    %158 = arith.addf %155, %157 : vector<4x256xf32>
    %c0_48 = arith.constant 0 : index
    %c12_49 = arith.constant 12 : index
    %159 = vector.load %arg10[%c0_48, %c12_49] : memref<4x36xf32, #tpu.memory_space<vmem>>, vector<4x4xf32>
    %cst_50 = arith.constant dense<0.000000e+00> : vector<4x256xf32>
    %160 = tpu.matmul %159, %123, %cst_50 {dimension_numbers = #tpu.dot_dimension_numbers<[1], [0], [0], [1], [0, 0, 1, 1], [], []>} : vector<4x4xf32>, vector<4x256xf32>, vector<4x256xf32> -> vector<4x256xf32>
    %161 = arith.addf %158, %160 : vector<4x256xf32>
    %c0_51 = arith.constant 0 : index
    %c16_52 = arith.constant 16 : index
    %162 = vector.load %arg10[%c0_51, %c16_52] : memref<4x36xf32, #tpu.memory_space<vmem>>, vector<4x4xf32>
    %cst_53 = arith.constant dense<0.000000e+00> : vector<4x256xf32>
    %163 = tpu.matmul %162, %126, %cst_53 {dimension_numbers = #tpu.dot_dimension_numbers<[1], [0], [0], [1], [0, 0, 1, 1], [], []>} : vector<4x4xf32>, vector<4x256xf32>, vector<4x256xf32> -> vector<4x256xf32>
    %164 = arith.addf %161, %163 : vector<4x256xf32>
    %c0_54 = arith.constant 0 : index
    %c20_55 = arith.constant 20 : index
    %165 = vector.load %arg10[%c0_54, %c20_55] : memref<4x36xf32, #tpu.memory_space<vmem>>, vector<4x4xf32>
    %cst_56 = arith.constant dense<0.000000e+00> : vector<4x256xf32>
    %166 = tpu.matmul %165, %132, %cst_56 {dimension_numbers = #tpu.dot_dimension_numbers<[1], [0], [0], [1], [0, 0, 1, 1], [], []>} : vector<4x4xf32>, vector<4x256xf32>, vector<4x256xf32> -> vector<4x256xf32>
    %167 = arith.addf %164, %166 : vector<4x256xf32>
    %c0_57 = arith.constant 0 : index
    %c24_58 = arith.constant 24 : index
    %168 = vector.load %arg10[%c0_57, %c24_58] : memref<4x36xf32, #tpu.memory_space<vmem>>, vector<4x4xf32>
    %cst_59 = arith.constant dense<0.000000e+00> : vector<4x256xf32>
    %169 = tpu.matmul %168, %138, %cst_59 {dimension_numbers = #tpu.dot_dimension_numbers<[1], [0], [0], [1], [0, 0, 1, 1], [], []>} : vector<4x4xf32>, vector<4x256xf32>, vector<4x256xf32> -> vector<4x256xf32>
    %170 = arith.addf %167, %169 : vector<4x256xf32>
    %c0_60 = arith.constant 0 : index
    %c28_61 = arith.constant 28 : index
    %171 = vector.load %arg10[%c0_60, %c28_61] : memref<4x36xf32, #tpu.memory_space<vmem>>, vector<4x4xf32>
    %cst_62 = arith.constant dense<0.000000e+00> : vector<4x256xf32>
    %172 = tpu.matmul %171, %144, %cst_62 {dimension_numbers = #tpu.dot_dimension_numbers<[1], [0], [0], [1], [0, 0, 1, 1], [], []>} : vector<4x4xf32>, vector<4x256xf32>, vector<4x256xf32> -> vector<4x256xf32>
    %173 = arith.addf %170, %172 : vector<4x256xf32>
    %c0_63 = arith.constant 0 : index
    %c32_64 = arith.constant 32 : index
    %174 = vector.load %arg10[%c0_63, %c32_64] : memref<4x36xf32, #tpu.memory_space<vmem>>, vector<4x4xf32>
    %cst_65 = arith.constant dense<0.000000e+00> : vector<4x256xf32>
    %175 = tpu.matmul %174, %150, %cst_65 {dimension_numbers = #tpu.dot_dimension_numbers<[1], [0], [0], [1], [0, 0, 1, 1], [], []>} : vector<4x4xf32>, vector<4x256xf32>, vector<4x256xf32> -> vector<4x256xf32>
    %176 = arith.addf %173, %175 : vector<4x256xf32>
    %c0_66 = arith.constant 0 : index
    %c0_67 = arith.constant 0 : index
    %177 = vector.load %arg11[%c0_66, %c0_67] : memref<4x1xf32, #tpu.memory_space<vmem>>, vector<4x1xf32>
    %178 = vector.broadcast %177 : vector<4x1xf32> to vector<4x256xf32>
    %179 = arith.addf %176, %178 : vector<4x256xf32>
    %c0_68 = arith.constant 0 : index
    %c0_69 = arith.constant 0 : index
    %180 = vector.load %arg12[%c0_68, %c0_69] : memref<4x4xf32, #tpu.memory_space<vmem>>, vector<4x4xf32>
    %cst_70 = arith.constant dense<0.000000e+00> : vector<4x256xf32>
    %181 = tpu.matmul %180, %1, %cst_70 {dimension_numbers = #tpu.dot_dimension_numbers<[1], [0], [0], [1], [0, 0, 1, 1], [], []>} : vector<4x4xf32>, vector<4x256xf32>, vector<4x256xf32> -> vector<4x256xf32>
    %c0_71 = arith.constant 0 : index
    %c0_72 = arith.constant 0 : index
    %182 = vector.load %arg13[%c0_71, %c0_72] : memref<4x4xf32, #tpu.memory_space<vmem>>, vector<4x4xf32>
    %cst_73 = arith.constant dense<0.000000e+00> : vector<4x256xf32>
    %183 = tpu.matmul %182, %89, %cst_73 {dimension_numbers = #tpu.dot_dimension_numbers<[1], [0], [0], [1], [0, 0, 1, 1], [], []>} : vector<4x4xf32>, vector<4x256xf32>, vector<4x256xf32> -> vector<4x256xf32>
    %184 = arith.addf %181, %183 : vector<4x256xf32>
    %c0_74 = arith.constant 0 : index
    %c0_75 = arith.constant 0 : index
    %185 = vector.load %arg14[%c0_74, %c0_75] : memref<4x4xf32, #tpu.memory_space<vmem>>, vector<4x4xf32>
    %cst_76 = arith.constant dense<0.000000e+00> : vector<4x256xf32>
    %186 = tpu.matmul %185, %179, %cst_76 {dimension_numbers = #tpu.dot_dimension_numbers<[1], [0], [0], [1], [0, 0, 1, 1], [], []>} : vector<4x4xf32>, vector<4x256xf32>, vector<4x256xf32> -> vector<4x256xf32>
    %187 = arith.addf %184, %186 : vector<4x256xf32>
    %c0_77 = arith.constant 0 : index
    %c0_78 = arith.constant 0 : index
    %188 = vector.load %arg15[%c0_77, %c0_78] : memref<4x1xf32, #tpu.memory_space<vmem>>, vector<4x1xf32>
    %189 = vector.broadcast %188 : vector<4x1xf32> to vector<4x256xf32>
    %190 = arith.addf %187, %189 : vector<4x256xf32>
    %191 = arith.addf %190, %1 : vector<4x256xf32>
    %c0_79 = arith.constant 0 : index
    %c0_80 = arith.constant 0 : index
    %c0_81 = arith.constant 0 : index
    %192 = vector.load %arg16[%c0_79, %c0_80, %c0_81] : memref<1x4x256xf32, #tpu.memory_space<vmem>>, vector<1x4x256xf32>
    %193 = vector.shape_cast %192 : vector<1x4x256xf32> to vector<4x256xf32>
    %194 = vector.shape_cast %191 : vector<4x256xf32> to vector<1x4x256xf32>
    tpu.vector_store %arg16[%c0_79, %c0_80, %c0_81], %194 {strides = array<i32>} : memref<1x4x256xf32, #tpu.memory_space<vmem>>, vector<1x4x256xf32>,
    return
  }
  func.func @transform_0(%arg0: i32) -> (i32, i32, i32) {
    %c0_i32 = arith.constant 0 : i32
    %c0_i32_0 = arith.constant 0 : i32
    %c0_i32_1 = arith.constant 0 : i32
    return %arg0, %c0_i32, %c0_i32_0 : i32, i32, i32
  }
  func.func @transform_1(%arg0: i32) -> (i32, i32) {
    %c0_i32 = arith.constant 0 : i32
    %c0_i32_0 = arith.constant 0 : i32
    %c0_i32_1 = arith.constant 0 : i32
    return %c0_i32, %c0_i32_0 : i32, i32
  }
  func.func @transform_2(%arg0: i32) -> (i32, i32) {
    %c0_i32 = arith.constant 0 : i32
    %c0_i32_0 = arith.constant 0 : i32
    %c0_i32_1 = arith.constant 0 : i32
    return %c0_i32, %c0_i32_0 : i32, i32
  }
  func.func @transform_3(%arg0: i32) -> (i32, i32) {
    %c0_i32 = arith.constant 0 : i32
    %c0_i32_0 = arith.constant 0 : i32
    %c0_i32_1 = arith.constant 0 : i32
    return %c0_i32, %c0_i32_0 : i32, i32
  }
  func.func @transform_4(%arg0: i32) -> (i32, i32) {
    %c0_i32 = arith.constant 0 : i32
    %c0_i32_0 = arith.constant 0 : i32
    %c0_i32_1 = arith.constant 0 : i32
    return %c0_i32, %c0_i32_0 : i32, i32
  }
  func.func @transform_5(%arg0: i32) -> (i32, i32) {
    %c0_i32 = arith.constant 0 : i32
    %c0_i32_0 = arith.constant 0 : i32
    %c0_i32_1 = arith.constant 0 : i32
    return %c0_i32, %c0_i32_0 : i32, i32
  }
  func.func @transform_6(%arg0: i32) -> (i32, i32) {
    %c0_i32 = arith.constant 0 : i32
    %c0_i32_0 = arith.constant 0 : i32
    %c0_i32_1 = arith.constant 0 : i32
    return %c0_i32, %c0_i32_0 : i32, i32
  }
  func.func @transform_7(%arg0: i32) -> (i32, i32) {
    %c0_i32 = arith.constant 0 : i32
    %c0_i32_0 = arith.constant 0 : i32
    %c0_i32_1 = arith.constant 0 : i32
    return %c0_i32, %c0_i32_0 : i32, i32
  }
  func.func @transform_8(%arg0: i32) -> (i32, i32) {
    %c0_i32 = arith.constant 0 : i32
    %c0_i32_0 = arith.constant 0 : i32
    %c0_i32_1 = arith.constant 0 : i32
    return %c0_i32, %c0_i32_0 : i32, i32
  }
  func.func @transform_9(%arg0: i32) -> (i32, i32) {
    %c0_i32 = arith.constant 0 : i32
    %c0_i32_0 = arith.constant 0 : i32
    %c0_i32_1 = arith.constant 0 : i32
    return %c0_i32, %c0_i32_0 : i32, i32
  }
  func.func @transform_10(%arg0: i32) -> (i32, i32) {
    %c0_i32 = arith.constant 0 : i32
    %c0_i32_0 = arith.constant 0 : i32
    %c0_i32_1 = arith.constant 0 : i32
    return %c0_i32, %c0_i32_0 : i32, i32
  }
  func.func @transform_11(%arg0: i32) -> (i32, i32) {
    %c0_i32 = arith.constant 0 : i32
    %c0_i32_0 = arith.constant 0 : i32
    %c0_i32_1 = arith.constant 0 : i32
    return %c0_i32, %c0_i32_0 : i32, i32
  }
  func.func @transform_12(%arg0: i32) -> (i32, i32) {
    %c0_i32 = arith.constant 0 : i32
    %c0_i32_0 = arith.constant 0 : i32
    %c0_i32_1 = arith.constant 0 : i32
    return %c0_i32, %c0_i32_0 : i32, i32
  }
  func.func @transform_13(%arg0: i32) -> (i32, i32) {
    %c0_i32 = arith.constant 0 : i32
    %c0_i32_0 = arith.constant 0 : i32
    %c0_i32_1 = arith.constant 0 : i32
    return %c0_i32, %c0_i32_0 : i32, i32
  }
  func.func @transform_14(%arg0: i32) -> (i32, i32) {
    %c0_i32 = arith.constant 0 : i32
    %c0_i32_0 = arith.constant 0 : i32
    %c0_i32_1 = arith.constant 0 : i32
    return %c0_i32, %c0_i32_0 : i32, i32
  }
  func.func @transform_15(%arg0: i32) -> (i32, i32, i32) {
    %c0_i32 = arith.constant 0 : i32
    %c0_i32_0 = arith.constant 0 : i32
    %c0_i32_1 = arith.constant 0 : i32
    return %arg0, %c0_i32, %c0_i32_0 : i32, i32, i32
  }
}

</mosaic_0001>

<bundles_post_ra>
// kernel: light_rb_forward.1
= control target key start
LH: loop header
LB: loop body
LE: loop exit
PB: predicated region body
PF: predicated region fallthrough
CT: control target
= control target key end

     0   :  { %s3085_s18 = smov 0   ;;  %s3507_s0 = inlined_call_operand.vmem [shape: f32[2,4,256], index: 0, kind: input, shape index: {}]   ;;  %s3508_s1 = inlined_call_operand.vmem [shape: f32[9,256], index: 1, kind: input, shape index: {}]   ;;  %s3509_s2 = inlined_call_operand.vmem [shape: f32[4,4], index: 2, kind: input, shape index: {}]   ;;  %s3510_s3 = inlined_call_operand.vmem [shape: f32[4,1], index: 3, kind: input, shape index: {}]   ;;  %s3511_s4 = inlined_call_operand.vmem [shape: f32[4,36], index: 4, kind: input, shape index: {}]   ;;  %s3512_s5 = inlined_call_operand.vmem [shape: f32[4,1], index: 5, kind: input, shape index: {}]   ;;  %s3513_s6 = inlined_call_operand.vmem [shape: f32[4,4], index: 6, kind: input, shape index: {}]   ;;  %s3514_s7 = inlined_call_operand.vmem [shape: f32[4,4], index: 7, kind: input, shape index: {}]   ;;  %s3515_s8 = inlined_call_operand.vmem [shape: f32[4,1], index: 8, kind: input, shape index: {}]   ;;  %s3516_s9 = inlined_call_operand.vmem [shape: f32[4,36], index: 9, kind: input, shape index: {}]   ;;  %s3517_s10 = inlined_call_operand.vmem [shape: f32[4,1], index: 10, kind: input, shape index: {}]   ;;  %s3518_s11 = inlined_call_operand.vmem [shape: f32[4,4], index: 11, kind: input, shape index: {}]   ;;  %s3519_s12 = inlined_call_operand.vmem [shape: f32[4,4], index: 12, kind: input, shape index: {}]   ;;  %s3520_s13 = inlined_call_operand.vmem [shape: f32[4,4], index: 13, kind: input, shape index: {}]   ;;  %s3521_s14 = inlined_call_operand.vmem [shape: f32[4,1], index: 14, kind: input, shape index: {}]   ;;  %s3522_s15 = inlined_call_operand.vmem [shape: f32[2,4,256], index: 15, kind: output, shape index: {}]  }
   0x1 LB: > { %s2827_s19 = sadd.s32 4294967295, %s2986_s18   ;;  %p2831_p0 = scmp.ge.s32.totalorder %s2986_s18, 1  ;;  %s2986_s18 = sphi %s3085_s18, %s25_s18  }
   0x2   : > { %p437_p1 = scmp.lt.s32.totalorder %s2986_s18, 3 }
   0x4   : > { %p438_p2 = pnand %p2831_p0, %p437_p1 }
   0x5   : > { %p485_p3 = scmp.lt.s32.totalorder (!%p438_p2), %s2827_s19, 1  ;;  %v2988_v0 = vmov (!%p438_p2), 0.0   ;;  %v501_v1 = vld [vmem:[%s3510_s3] sm:$0xf] (!%p438_p2)  ;;  %v2989_v2 = vmov (!%p438_p2), 0   ;;  %vm513_vm0 = vcmask (!%p438_p2), 1043456   ;;  %v603_v16 = vlaneseq (!%p438_p2) }
   0x6   : > { %441 = sbr.rel (%p438_p2) target bundleno = 1485 (0x5cd), region = 80  ;;  %582 = vmatprep.mubr.f32.mxu0 (!%p438_p2), %v2988_v0  ;;  %839 = vmatprep.mubr.f32.mxu1 (!%p438_p2), %v2988_v0  ;;  %v500_v5 = vld [vmem:[%s3509_s2] sm:$0xf] (!%p438_p2)  ;;  %vm509_vm1 = vcmask (!%p438_p2), 31744   ;;  %s2990_s28 = smov (!%p438_p2), 16   ;;  %v3195_v20 = vld [vmem:[%s3508_s1 + $0x8] sm:$0xff] (!%p438_p2) }
   0x7   : > { %2977 = vset.pattern.permute.xlu0 (!%p438_p2), %v2989_v2  ;;  %2978 = vset.pattern.permute.xlu1 (!%p438_p2), %v2989_v2  ;;  %v3132_v13 = vld [vmem:[%s3511_s4] sm:$0xf] (!%p438_p2)  ;;  %s2991_s16 = smov (!%p438_p2), 124   ;;  %s2992_s17 = smov (!%p438_p2), 17   ;;  %v3184_v17 = vshrl.u32 (!%p438_p2), %v603_v16, 7  ;;  %vm618_vm2 = vcmask (!%p438_p2), 130048  }
   0x8   : > { %504 = vperm.xlu0 (!%p438_p2), %2977, %v501_v1   ;;  %s2993_s20 = smov (!%p438_p2), 15   ;;  %s2994_s21 = smov (!%p438_p2), 120   ;;  %v1670_v14 = vld [vmem:[%s3515_s8] sm:$0xf] (!%p438_p2)  ;;  %vm598_vm3 = vcmask (!%p438_p2), 138240   ;;  %vm638_vm4 = vcmask (!%p438_p2), 121856  }
   0x9   : > { %s3537_s23 = smov (!%p438_p2), 1   ;;  %s3530_s24 = smov (!%p438_p2), 116   ;;  %v1506_v15 = vld [vmem:[%s3512_s5] sm:$0xf] (!%p438_p2)  ;;  %v625_v18 = vsub.s32 (!%p438_p2), 1, %v3184_v17  ;;  %v605_v27 = vsub.s32 (!%p438_p2), 0, %v3184_v17 }
   0xa   : > { %s3528_s26 = smov (!%p438_p2), 127   ;;  %s3524_s27 = smov (!%p438_p2), 108   ;;  %v3190_v19 = vld [vmem:[%s3508_s1] sm:$0xff] (!%p438_p2)  ;;  %v645_v34 = vsub.s32 (!%p438_p2), 2, %v3184_v17  ;;  %v665_v43 = vsub.s32 (!%p438_p2), 3, %v3184_v17  ;;  %vm658_vm5 = vcmask (!%p438_p2), 7168  }
   0xb   : > { %s3525_s29 = smov (!%p438_p2), 113   ;;  %s3527_s30 = smov (!%p438_p2), 104   ;;  %v3198_v21 = vrot.slane (!%p438_p2), %v3190_v19, %v625_v18  ;;  %v3201_v22 = vrot.slane (!%p438_p2), %v3195_v20, %v625_v18  ;;  %v3211_v32 = vrot.slane (!%p438_p2), %v3190_v19, %v605_v27  ;;  %v3214_v33 = vrot.slane (!%p438_p2), %v3195_v20, %v605_v27 }
   0xc   : > { %v3224_v41 = vrot.slane (!%p438_p2), %v3190_v19, %v645_v34  ;;  %v3227_v42 = vrot.slane (!%p438_p2), %v3195_v20, %v645_v34  ;;  %v3239_v50 = vrot.slane (!%p438_p2), %v3195_v20, %v665_v43  ;;  %v675_v51 = vsub.s32 (!%p438_p2), 4, %v3184_v17 }
   0xd   : > { %s3551_s19 = smov (!%p485_p3, %s2827_s19), 1  ;;  %v3246_v54 = vrot.slane %v3190_v19, %v665_v43  ;;  %v695_v63 = vsub.s32 5, %v3184_v17  ;;  %vm687_vm6 = vcmask 1039360   ;;  %vm707_vm7 = vcmask 924672  }
   0xe   : > { %s3523_s22 = sshll.u32 %s3551_s19, 3  ;;  %v3252_v58 = vrot.slane %v3195_v20, %v675_v51  ;;  %v735_v27 = vsub.s32 7, %v3184_v17  ;;  %vm727_vm8 = vcmask 916480   ;;  %vm747_vm9 = vcmask 908288  }
   0xf   : > { %s489_s25 = scalar_lea.vmem %s3507_s0, %s3523_s22  ;;  %s3533_s22 = smov 100  }
  0x10   : > { %v3106_v3 = vld [vmem:[%s489_s25] sm:$0xff]  ;;  %s3531_s25 = smov 112  }
  0x11   : > { %v3110_v4 = vcombine.high %v3106_v3, %v3106_v3 }
  0x13   : > { %2836 = vmatprep.subr.msk.mxu0 %vm513_vm0, %v3110_v4 }
  0x14   : > { %2837 = vmatpush1.msk.msra.mxu0 %vm513_vm0, %v3106_v3 }
  0x15   : > { %2838 = vmatmul.mubr.msk.f32.vlgmr.msra.gmra.mrb[0].mxu0 %vm509_vm1, %v500_v5  ;;  %v3264_v5 = vrot.slane %v3190_v19, %v675_v51 }
  0x16   : > { %1589 = vmatprep.mubr.f32.mxu0 %v2988_v0 }
  0x87   : > { %v505_v6 = vpop.permute.xlu0 %504 }
  0xe8   : > { %v584_v7 = vpop.f32.mrb[0].mxu0 }
  0xe9   : > { %v585_v8 = vadd.f32 %v584_v7, %v505_v6  ;;  %v586_v9 = vpop.f32.mrb[1].mxu0 }
  0xea   : > { %v587_v10 = vadd.f32 %v586_v9, %v505_v6  ;;  %v3267_v6 = vrot.slane %v3195_v20, %v695_v63 }
  0xeb   : > { %v3121_v11 = vmax.f32 %v585_v8, 0.0 }
  0xec   : > { %v3123_v12 = vmax.f32 %v587_v10, 0.0 }
  0xed   : > { %616 = vrot.lane.b32.xlu1 %v3121_v11, %s2990_s28  ;;  %v681_v10 = vmul.f32 %v3264_v5, %v3121_v11 }
  0xee   : > { %613 = vrot.lane.b32.xlu0 %v3123_v12, %s2990_s28  ;;  %v682_v62 = vmul.f32 %v3252_v58, %v3123_v12 }
  0xf1   : > { %765 = vrot.lane.b32.xlu1 %v3132_v13, %s2991_s16 }
  0xf2   : > { %592 = vrot.lane.b32.xlu0 %v3123_v12, %s2992_s17 }
  0xf5   : > { %596 = vrot.lane.b32.xlu1 %v3121_v11, %s2992_s17 }
  0xf6   : > { %633 = vrot.lane.b32.xlu0 %v3123_v12, %s2993_s20 }
  0xf9   : > { %636 = vrot.lane.b32.xlu1 %v3121_v11, %s2993_s20 }
  0xfa   : > { %925 = vrot.lane.b32.xlu0 %v3132_v13, %s2994_s21 }
  0xfd   : > { %653 = vrot.lane.b32.xlu1 %v3123_v12, %s3537_s23 }
  0xfe   : > { %656 = vrot.lane.b32.xlu0 %v3121_v11, %s3537_s23 }
 0x101   : > { %1008 = vrot.lane.b32.xlu1 %v3132_v13, %s3530_s24  ;;  %s3540_s24 = smov 112  }
 0x102   : > { %1091 = vrot.lane.b32.xlu0 %v3132_v13, %s3531_s25 }
 0x105   : > { %683 = vrot.lane.b32.xlu1 %v3121_v11, %s3528_s26 }
 0x106   : > { %685 = vrot.lane.b32.xlu0 %v3123_v12, %s3528_s26  ;;  %s3546_s26 = smov 111  }
 0x109   : > { %1174 = vrot.lane.b32.xlu1 %v3132_v13, %s3524_s27  ;;  %s3534_s27 = smov 111  }
 0x10a   : > { %703 = vrot.lane.b32.xlu0 %v3121_v11, %s3525_s29 }
 0x10d   : > { %705 = vrot.lane.b32.xlu1 %v3123_v12, %s3525_s29  ;;  %s3536_s29 = smov 96  }
 0x10e   : > { %1257 = vrot.lane.b32.xlu0 %v3132_v13, %s3527_s30 }
 0x111   : > { %723 = vrot.lane.b32.xlu1 %v3121_v11, %s3531_s25 }
 0x112   : > { %725 = vrot.lane.b32.xlu0 %v3123_v12, %s3531_s25  ;;  %s3542_s25 = smov 127  }
 0x115   : > { %1340 = vrot.lane.b32.xlu1 %v3132_v13, %s3533_s22 }
 0x116   : > { %743 = vrot.lane.b32.xlu0 %v3121_v11, %s3534_s27 }
 0x119   : > { %745 = vrot.lane.b32.xlu1 %v3123_v12, %s3534_s27  ;;  %s3547_s27 = smov 100  }
 0x11a   : > { %1423 = vrot.lane.b32.xlu0 %v3132_v13, %s3536_s29  ;;  %s3548_s29 = smov 96  }
 0x11d   : > { %1509 = vperm.xlu1 %2978, %v1506_v15   ;;  %v3279_v15 = vrot.slane %v3190_v19, %v695_v63 }
 0x11e   : > { %1673 = vperm.xlu0 %2977, %v1670_v14  }
 0x15f   : > { %v617_v23 = vpop.permute.xlu1 %616 }
 0x160   : > { %v614_v24 = vpop.permute.xlu0 %613 }
 0x161   : > { %v619_v25 = vsel %vm618_vm2, %v617_v23, %v614_v24  ;;  %v622_v26 = vsel %vm618_vm2, %v614_v24, %v617_v23 }
 0x162   : > { %v631_v28 = vmul.f32 %v3198_v21, %v622_v26  ;;  %v632_v29 = vmul.f32 %v3201_v22, %v619_v25 }
 0x163   : > { %v766_v30 = vpop.permute.xlu1 %765 }
 0x164   : > { %v593_v31 = vpop.permute.xlu0 %592  ;;  %2841 = vmatprep.subr.msk.mxu1 %vm513_vm0, %v632_v29 }
 0x165   : > { %2842 = vmatpush1.msk.msra.mxu1 %vm513_vm0, %v631_v28 }
 0x166   : > { %2843 = vmatmul.mubr.msk.f32.vlgmr.msra.gmra.mrb[0].mxu1 %vm509_vm1, %v766_v30 }
 0x167   : > { %v597_v35 = vpop.permute.xlu1 %596  ;;  %918 = vmatprep.mubr.f32.mxu1 %v2988_v0 }
 0x168   : > { %v599_v36 = vsel %vm598_vm3, %v597_v35, %v593_v31  ;;  %v602_v37 = vsel %vm598_vm3, %v593_v31, %v597_v35  ;;  %v634_v38 = vpop.permute.xlu0 %633  ;;  %v3298_v31 = vrot.slane %v3195_v20, %v735_v27 }
 0x169   : > { %v611_v39 = vmul.f32 %v3211_v32, %v602_v37  ;;  %v612_v40 = vmul.f32 %v3214_v33, %v599_v36 }
 0x16b   : > { %2844 = vmatprep.subr.msk.mxu1 %vm513_vm0, %v612_v40  ;;  %v637_v44 = vpop.permute.xlu1 %636  ;;  %v3314_v40 = vld [vmem:[%s3508_s1 + $0x18] ss:$0 sm:$0xff] }
 0x16c   : > { %v639_v45 = vsel %vm638_vm4, %v637_v44, %v634_v38  ;;  %v642_v46 = vsel %vm638_vm4, %v634_v38, %v637_v44  ;;  %v926_v47 = vpop.permute.xlu0 %925  ;;  %2845 = vmatpush1.msk.msra.mxu1 %vm513_vm0, %v611_v39 }
 0x16d   : > { %v651_v48 = vmul.f32 %v3224_v41, %v642_v46  ;;  %v652_v49 = vmul.f32 %v3227_v42, %v639_v45 }
 0x16e   : > { %2846 = vmatmul.mubr.msk.f32.vlgmr.msra.gmra.mrb[0].mxu1 %vm509_vm1, %v3132_v13  ;;  %v715_v13 = vsub.s32 6, %v3184_v17 }
 0x16f   : > { %2847 = vmatprep.subr.msk.mxu1 %vm513_vm0, %v652_v49  ;;  %v654_v52 = vpop.permute.xlu1 %653  ;;  %999 = vmatprep.mubr.f32.mxu1 %v2988_v0 }
 0x170   : > { %v657_v53 = vpop.permute.xlu0 %656  ;;  %2848 = vmatpush1.msk.msra.mxu1 %vm513_vm0, %v651_v48  ;;  %v3283_v11 = vrot.slane %v3195_v20, %v715_v13  ;;  %v3294_v29 = vrot.slane %v3190_v19, %v715_v13  ;;  %v3308_v20 = vrot.slane %v3190_v19, %v735_v27  ;;  %v3326_v19 = vld [vmem:[%s3508_s1 + $0x10] ss:$0 sm:$0xff] }
 0x171   : > { %v659_v55 = vsel %vm658_vm5, %v657_v53, %v654_v52  ;;  %v662_v56 = vsel %vm658_vm5, %v654_v52, %v657_v53 }
 0x172   : > { %v672_v57 = vmul.f32 %v3239_v50, %v659_v55  ;;  %v671_v61 = vmul.f32 %v3246_v54, %v662_v56  ;;  %v1515_v56 = vld [vmem:[%s3514_s7] sm:$0xf] }
 0x173   : > { %v1009_v59 = vpop.permute.xlu1 %1008 }
 0x174   : > { %v1092_v60 = vpop.permute.xlu0 %1091  ;;  %2850 = vmatprep.subr.msk.mxu1 %vm513_vm0, %v672_v57  ;;  %v1514_v57 = vld [vmem:[%s3513_s6] sm:$0xf] }
 0x176   : > { %2849 = vmatmul.mubr.msk.f32.vlgmr.msra.gmra.mrb[0].mxu1 %vm509_vm1, %v926_v47 }
 0x177   : > { %2851 = vmatpush1.msk.msra.mxu1 %vm513_vm0, %v671_v61  ;;  %v684_v1 = vpop.permute.xlu1 %683  ;;  %1082 = vmatprep.mubr.f32.mxu1 %v2988_v0 }
 0x178   : > { %2853 = vmatprep.subr.msk.mxu1 %vm513_vm0, %v682_v62  ;;  %v686_v2 = vpop.permute.xlu0 %685 }
 0x179   : > { %v692_v7 = vsel %vm687_vm6, %v686_v2, %v684_v1  ;;  %v688_v16 = vsel %vm687_vm6, %v684_v1, %v686_v2 }
 0x17a   : > { %v702_v12 = vmul.f32 %v3267_v6, %v692_v7  ;;  %v701_v25 = vmul.f32 %v3279_v15, %v688_v16  ;;  %v1772_v7 = vld [vmem:[%s3516_s9] sm:$0xf] }
 0x17b   : > { %v1175_v8 = vpop.permute.xlu1 %1174 }
 0x17c   : > { %v704_v9 = vpop.permute.xlu0 %703 }
 0x17e   : > { %2852 = vmatmul.mubr.msk.f32.vlgmr.msra.gmra.mrb[0].mxu1 %vm509_vm1, %v1009_v59 }
 0x17f   : > { %2854 = vmatpush1.msk.msra.mxu1 %vm513_vm0, %v681_v10  ;;  %v706_v14 = vpop.permute.xlu1 %705  ;;  %1165 = vmatprep.mubr.f32.mxu1 %v2988_v0  ;;  %v2524_v10 = vld [vmem:[%s3519_s12] sm:$0xf] }
 0x180   : > { %2856 = vmatprep.subr.msk.mxu1 %vm513_vm0, %v702_v12  ;;  %v1258_v18 = vpop.permute.xlu0 %1257  ;;  %v712_v23 = vsel %vm707_vm7, %v706_v14, %v704_v9  ;;  %v708_v30 = vsel %vm707_vm7, %v704_v9, %v706_v14  ;;  %v2515_v9 = vld [vmem:[%s3517_s10] sm:$0xf] }
 0x181   : > { %v722_v26 = vmul.f32 %v3283_v11, %v712_v23  ;;  %v721_v35 = vmul.f32 %v3294_v29, %v708_v30  ;;  %v2523_v12 = vld [vmem:[%s3518_s11] sm:$0xf] }
 0x183   : > { %v724_v24 = vpop.permute.xlu1 %723 }
 0x184   : > { %v726_v28 = vpop.permute.xlu0 %725 }
 0x185   : > { %v732_v17 = vsel %vm727_vm8, %v726_v28, %v724_v24  ;;  %v728_v38 = vsel %vm727_vm8, %v724_v24, %v726_v28 }
 0x186   : > { %2855 = vmatmul.mubr.msk.f32.vlgmr.msra.gmra.mrb[0].mxu1 %vm509_vm1, %v1092_v60  ;;  %v742_v36 = vmul.f32 %v3298_v31, %v732_v17  ;;  %v741_v44 = vmul.f32 %v3308_v20, %v728_v38 }
 0x187   : > { %2857 = vmatpush1.msk.msra.mxu1 %vm513_vm0, %v701_v25  ;;  %1248 = vmatprep.mubr.f32.mxu1 %v2988_v0  ;;  %v1341_v34 = vpop.permute.xlu1 %1340 }
 0x188   : > { %2859 = vmatprep.subr.msk.mxu1 %vm513_vm0, %v722_v26  ;;  %v744_v39 = vpop.permute.xlu0 %743 }
 0x18b   : > { %v746_v37 = vpop.permute.xlu1 %745 }
 0x18c   : > { %v752_v43 = vsel %vm747_vm9, %v746_v37, %v744_v39  ;;  %v748_v46 = vsel %vm747_vm9, %v744_v39, %v746_v37  ;;  %v1424_v48 = vpop.permute.xlu0 %1423 }
 0x18d   : > { %v762_v45 = vmul.f32 %v3314_v40, %v752_v43  ;;  %v761_v47 = vmul.f32 %v3326_v19, %v748_v46 }
 0x18e   : > { %2858 = vmatmul.mubr.msk.f32.vlgmr.msra.gmra.mrb[0].mxu1 %vm509_vm1, %v1175_v8  ;;  %v2756_v8 = vld [vmem:[%s3521_s14] sm:$0xf] }
 0x18f   : > { %2860 = vmatpush1.msk.msra.mxu1 %vm513_vm0, %v721_v35  ;;  %1331 = vmatprep.mubr.f32.mxu1 %v2988_v0 }
 0x190   : > { %2862 = vmatprep.subr.msk.mxu1 %vm513_vm0, %v742_v36 }
 0x196   : > { %2861 = vmatmul.mubr.msk.f32.vlgmr.msra.gmra.mrb[0].mxu1 %vm509_vm1, %v1258_v18 }
 0x197   : > { %2863 = vmatpush1.msk.msra.mxu1 %vm513_vm0, %v741_v44  ;;  %1414 = vmatprep.mubr.f32.mxu1 %v2988_v0 }
 0x198   : > { %2865 = vmatprep.subr.msk.mxu1 %vm513_vm0, %v762_v45 }
 0x19c   : > { %v1510_v49 = vpop.permute.xlu1 %1509 }
 0x19d   : > { %v1674_v59 = vpop.permute.xlu0 %1673 }
 0x19e   : > { %2864 = vmatmul.mubr.msk.f32.vlgmr.msra.gmra.mrb[0].mxu1 %vm509_vm1, %v1341_v34 }
 0x19f   : > { %2866 = vmatpush1.msk.msra.mxu1 %vm513_vm0, %v761_v47  ;;  %1497 = vmatprep.mubr.f32.mxu1 %v2988_v0 }
 0x1a6   : > { %2867 = vmatmul.mubr.msk.f32.vlgmr.msra.gmra.mrb[0].mxu1 %vm509_vm1, %v1424_v48 }
 0x1a7   : > { %2592 = vmatprep.mubr.f32.mxu1 %v2988_v0 }
 0x279   : > { %v1499_v51 = vpop.f32.mrb[0].mxu1 }
 0x27a   : > { %v1501_v52 = vpop.f32.mrb[1].mxu1  ;;  %v1512_v55 = vadd.f32 %v1510_v49, %v1499_v51 }
 0x27b   : > { %v1513_v53 = vadd.f32 %v1510_v49, %v1501_v52 }
 0x27d   : > { %2868 = vmatprep.subr.msk.mxu0 %vm513_vm0, %v1513_v53  ;;  %2901 = vmatprep.subr.msk.mxu1 %vm513_vm0, %v1513_v53 }
 0x27e   : > { %2869 = vmatpush1.msk.msra.mxu0 %vm513_vm0, %v1512_v55  ;;  %2902 = vmatpush1.msk.msra.mxu1 %vm513_vm0, %v1512_v55 }
 0x27f   : > { %2870 = vmatmul.mubr.msk.f32.vlgmr.msra.gmra.mrb[2].mxu0 %vm509_vm1, %v1515_v56  ;;  %2871 = vmatprep.subr.msk.mxu0 %vm513_vm0, %v3110_v4 }
 0x280   : > { %2872 = vmatpush1.msk.msra.mxu0 %vm513_vm0, %v3106_v3  ;;  %1663 = vmatprep.mubr.f32.mxu0 %v2988_v0 }
 0x281   : > { %2904 = vmatprep.subr.msk.mxu1 %vm513_vm0, %v3110_v4  ;;  %2903 = vmatmul.mubr.msk.f32.vlgmr.msra.gmra.mrb[2].mxu1 %vm509_vm1, %v2524_v10 }
 0x282   : > { %2905 = vmatpush1.msk.msra.mxu1 %vm513_vm0, %v3106_v3  ;;  %2666 = vmatprep.mubr.f32.mxu1 %v2988_v0 }
 0x287   : > { %2873 = vmatmul.mubr.msk.f32.vlgmr.msra.gmra.mrb[2].mxu0 %vm509_vm1, %v1514_v57 }
 0x288   : > { %1848 = vmatprep.mubr.f32.mxu0 %v2988_v0 }
 0x289   : > { %2906 = vmatmul.mubr.msk.f32.vlgmr.msra.gmra.mrb[2].mxu1 %vm509_vm1, %v2523_v12 }
 0x28a   : > { %2747 = vmatprep.mubr.f32.mxu1 %v2988_v0 }
 0x35a   : > { %v1665_v60 = vpop.f32.mrb[2].mxu0 }
 0x35b   : > { %v1676_v61 = vadd.f32 %v1674_v59, %v1665_v60  ;;  %v1667_v62 = vpop.f32.mrb[3].mxu0 }
 0x35c   : > { %v1677_v63 = vadd.f32 %v1674_v59, %v1667_v62 }
 0x35d   : > { %v3355_v1 = vmax.f32 %v1676_v61, 0.0 }
 0x35e   : > { %v3357_v2 = vmax.f32 %v1677_v63, 0.0 }
 0x35f   : > { %1696 = vrot.lane.b32.xlu0 %v3355_v1, %s2990_s28 }
 0x360   : > { %1693 = vrot.lane.b32.xlu1 %v3357_v2, %s2990_s28  ;;  %s3539_s28 = smov 1   ;;  %v1727_v47 = vmul.f32 %v3357_v2, %v3252_v58 }
 0x363   : > { %1681 = vrot.lane.b32.xlu0 %v3357_v2, %s2992_s17 }
 0x364   : > { %1774 = vrot.lane.b32.xlu1 %v1772_v7, %s2991_s16  ;;  %s3541_s16 = smov 116  }
 0x367   : > { %1704 = vrot.lane.b32.xlu0 %v3357_v2, %s2993_s20 }
 0x368   : > { %1685 = vrot.lane.b32.xlu1 %v3355_v1, %s2992_s17  ;;  %s3543_s17 = smov 113  }
 0x36b   : > { %1934 = vrot.lane.b32.xlu0 %v1772_v7, %s2994_s21  ;;  %s3545_s21 = smov 104  }
 0x36c   : > { %1707 = vrot.lane.b32.xlu1 %v3355_v1, %s2993_s20  ;;  %s3544_s20 = smov 108  }
 0x36f   : > { %1718 = vrot.lane.b32.xlu0 %v3355_v1, %s3539_s28 }
 0x370   : > { %1715 = vrot.lane.b32.xlu1 %v3357_v2, %s3539_s28 }
 0x373   : > { %2100 = vrot.lane.b32.xlu0 %v1772_v7, %s3540_s24 }
 0x374   : > { %2017 = vrot.lane.b32.xlu1 %v1772_v7, %s3541_s16 }
 0x377   : > { %1730 = vrot.lane.b32.xlu0 %v3357_v2, %s3542_s25 }
 0x378   : > { %1728 = vrot.lane.b32.xlu1 %v3355_v1, %s3542_s25 }
 0x37b   : > { %1739 = vrot.lane.b32.xlu0 %v3355_v1, %s3543_s17 }
 0x37c   : > { %2183 = vrot.lane.b32.xlu1 %v1772_v7, %s3544_s20 }
 0x37f   : > { %2266 = vrot.lane.b32.xlu0 %v1772_v7, %s3545_s21 }
 0x380   : > { %1741 = vrot.lane.b32.xlu1 %v3357_v2, %s3543_s17 }
 0x383   : > { %1752 = vrot.lane.b32.xlu0 %v3357_v2, %s3540_s24 }
 0x384   : > { %1750 = vrot.lane.b32.xlu1 %v3355_v1, %s3540_s24 }
 0x387   : > { %1761 = vrot.lane.b32.xlu0 %v3355_v1, %s3546_s26 }
 0x388   : > { %2349 = vrot.lane.b32.xlu1 %v1772_v7, %s3547_s27 }
 0x38b   : > { %2432 = vrot.lane.b32.xlu0 %v1772_v7, %s3548_s29 }
 0x38c   : > { %1763 = vrot.lane.b32.xlu1 %v3357_v2, %s3546_s26  ;;  %s3549_s26 = sshll.u32 %s3551_s19, 3 }
 0x38d   : > { %s494_s30 = scalar_lea.vmem %s3522_s15, %s3549_s26 }
 0x38f   : > { %2759 = vperm.xlu0 %2977, %v2756_v8  }
 0x390   : > { %2518 = vperm.xlu1 %2978, %v2515_v9  }
 0x3d1   : > { %v1697_v13 = vpop.permute.xlu0 %1696 }
 0x3d2   : > { %v1694_v14 = vpop.permute.xlu1 %1693 }
 0x3d3   : > { %v1698_v16 = vsel %vm618_vm2, %v1697_v13, %v1694_v14  ;;  %v1701_v18 = vsel %vm618_vm2, %v1694_v14, %v1697_v13 }
 0x3d4   : > { %v1702_v23 = vmul.f32 %v1701_v18, %v3198_v21  ;;  %v1703_v24 = vmul.f32 %v1698_v16, %v3201_v22  ;;  %v2673_v18 = vld [vmem:[%s3520_s13] sm:$0xf] }
 0x3d5   : > { %v1682_v25 = vpop.permute.xlu0 %1681 }
 0x3d6   : > { %2874 = vmatprep.subr.msk.mxu0 %vm513_vm0, %v1703_v24  ;;  %v1775_v26 = vpop.permute.xlu1 %1774 }
 0x3d7   : > { %2875 = vmatpush1.msk.msra.mxu0 %vm513_vm0, %v1702_v23 }
 0x3d8   : > { %2876 = vmatmul.mubr.msk.f32.vlgmr.msra.gmra.mrb[4].mxu0 %vm509_vm1, %v1775_v26 }
 0x3d9   : > { %v1705_v27 = vpop.permute.xlu0 %1704  ;;  %1927 = vmatprep.mubr.f32.mxu0 %v2988_v0 }
 0x3da   : > { %v1686_v28 = vpop.permute.xlu1 %1685 }
 0x3db   : > { %v1687_v30 = vsel %vm598_vm3, %v1686_v28, %v1682_v25  ;;  %v1690_v34 = vsel %vm598_vm3, %v1682_v25, %v1686_v28 }
 0x3dc   : > { %v1691_v21 = vmul.f32 %v1690_v34, %v3211_v32  ;;  %v1692_v22 = vmul.f32 %v1687_v30, %v3214_v33 }
 0x3dd   : > { %v1935_v17 = vpop.permute.xlu0 %1934 }
 0x3de   : > { %2877 = vmatprep.subr.msk.mxu0 %vm513_vm0, %v1692_v22  ;;  %v1708_v35 = vpop.permute.xlu1 %1707 }
 0x3df   : > { %v1709_v36 = vsel %vm638_vm4, %v1708_v35, %v1705_v27  ;;  %v1712_v37 = vsel %vm638_vm4, %v1705_v27, %v1708_v35  ;;  %2878 = vmatpush1.msk.msra.mxu0 %vm513_vm0, %v1691_v21 }
 0x3e0   : > { %v1713_v38 = vmul.f32 %v1712_v37, %v3224_v41  ;;  %v1714_v39 = vmul.f32 %v1709_v36, %v3227_v42  ;;  %2879 = vmatmul.mubr.msk.f32.vlgmr.msra.gmra.mrb[4].mxu0 %vm509_vm1, %v1772_v7 }
 0x3e1   : > { %v1719_v43 = vpop.permute.xlu0 %1718  ;;  %2008 = vmatprep.mubr.f32.mxu0 %v2988_v0 }
 0x3e2   : > { %2880 = vmatprep.subr.msk.mxu0 %vm513_vm0, %v1714_v39  ;;  %v1716_v32 = vpop.permute.xlu1 %1715 }
 0x3e3   : > { %v1720_v33 = vsel %vm658_vm5, %v1719_v43, %v1716_v32  ;;  %2881 = vmatpush1.msk.msra.mxu0 %vm513_vm0, %v1713_v38  ;;  %v1723_v44 = vsel %vm658_vm5, %v1716_v32, %v1719_v43 }
 0x3e4   : > { %v1725_v45 = vmul.f32 %v1720_v33, %v3239_v50  ;;  %v1724_v42 = vmul.f32 %v1723_v44, %v3246_v54  ;;  %v1726_v54 = vmul.f32 %v3355_v1, %v3264_v5 }
 0x3e5   : > { %v2101_v46 = vpop.permute.xlu0 %2100 }
 0x3e6   : > { %2883 = vmatprep.subr.msk.mxu0 %vm513_vm0, %v1725_v45  ;;  %v2018_v41 = vpop.permute.xlu1 %2017 }
 0x3e8   : > { %2882 = vmatmul.mubr.msk.f32.vlgmr.msra.gmra.mrb[4].mxu0 %vm509_vm1, %v1935_v17 }
 0x3e9   : > { %2884 = vmatpush1.msk.msra.mxu0 %vm513_vm0, %v1724_v42  ;;  %v1731_v48 = vpop.permute.xlu0 %1730  ;;  %2091 = vmatprep.mubr.f32.mxu0 %v2988_v0 }
 0x3ea   : > { %2886 = vmatprep.subr.msk.mxu0 %vm513_vm0, %v1727_v47  ;;  %v1729_v49 = vpop.permute.xlu1 %1728 }
 0x3eb   : > { %v1736_v50 = vsel %vm687_vm6, %v1731_v48, %v1729_v49  ;;  %v1732_v55 = vsel %vm687_vm6, %v1729_v49, %v1731_v48 }
 0x3ec   : > { %v1738_v53 = vmul.f32 %v1736_v50, %v3267_v6  ;;  %v1737_v60 = vmul.f32 %v1732_v55, %v3279_v15 }
 0x3ed   : > { %v1740_v51 = vpop.permute.xlu0 %1739 }
 0x3ee   : > { %v2184_v52 = vpop.permute.xlu1 %2183 }
 0x3f0   : > { %2885 = vmatmul.mubr.msk.f32.vlgmr.msra.gmra.mrb[4].mxu0 %vm509_vm1, %v2018_v41 }
 0x3f1   : > { %2887 = vmatpush1.msk.msra.mxu0 %vm513_vm0, %v1726_v54  ;;  %2174 = vmatprep.mubr.f32.mxu0 %v2988_v0  ;;  %v2267_v56 = vpop.permute.xlu0 %2266 }
 0x3f2   : > { %2889 = vmatprep.subr.msk.mxu0 %vm513_vm0, %v1738_v53  ;;  %v1742_v58 = vpop.permute.xlu1 %1741 }
 0x3f3   : > { %v1747_v57 = vsel %vm707_vm7, %v1742_v58, %v1740_v51  ;;  %v1743_v61 = vsel %vm707_vm7, %v1740_v51, %v1742_v58 }
 0x3f4   : > { %v1749_v5 = vmul.f32 %v1747_v57, %v3283_v11  ;;  %v1748_v1 = vmul.f32 %v1743_v61, %v3294_v29 }
 0x3f5   : > { %v1753_v6 = vpop.permute.xlu0 %1752 }
 0x3f6   : > { %v1751_v59 = vpop.permute.xlu1 %1750 }
 0x3f7   : > { %v1758_v63 = vsel %vm727_vm8, %v1753_v6, %v1751_v59  ;;  %v1754_v2 = vsel %vm727_vm8, %v1751_v59, %v1753_v6 }
 0x3f8   : > { %2888 = vmatmul.mubr.msk.f32.vlgmr.msra.gmra.mrb[4].mxu0 %vm509_vm1, %v2101_v46  ;;  %v1760_v15 = vmul.f32 %v1758_v63, %v3298_v31  ;;  %v1759_v9 = vmul.f32 %v1754_v2, %v3308_v20 }
 0x3f9   : > { %2890 = vmatpush1.msk.msra.mxu0 %vm513_vm0, %v1737_v60  ;;  %2257 = vmatprep.mubr.f32.mxu0 %v2988_v0  ;;  %v1762_v7 = vpop.permute.xlu0 %1761 }
 0x3fa   : > { %2892 = vmatprep.subr.msk.mxu0 %vm513_vm0, %v1749_v5  ;;  %v2350_v62 = vpop.permute.xlu1 %2349 }
 0x3fd   : > { %v2433_v20 = vpop.permute.xlu0 %2432 }
 0x3fe   : > { %v1764_v11 = vpop.permute.xlu1 %1763 }
 0x3ff   : > { %v1769_v8 = vsel %vm747_vm9, %v1764_v11, %v1762_v7  ;;  %v1765_v31 = vsel %vm747_vm9, %v1762_v7, %v1764_v11 }
 0x400   : > { %2891 = vmatmul.mubr.msk.f32.vlgmr.msra.gmra.mrb[4].mxu0 %vm509_vm1, %v2184_v52  ;;  %v1771_v29 = vmul.f32 %v3314_v40, %v1769_v8  ;;  %v1770_v10 = vmul.f32 %v3326_v19, %v1765_v31 }
 0x401   : > { %2893 = vmatpush1.msk.msra.mxu0 %vm513_vm0, %v1748_v1  ;;  %2340 = vmatprep.mubr.f32.mxu0 %v2988_v0 }
 0x402   : > { %2895 = vmatprep.subr.msk.mxu0 %vm513_vm0, %v1760_v15 }
 0x408   : > { %2894 = vmatmul.mubr.msk.f32.vlgmr.msra.gmra.mrb[4].mxu0 %vm509_vm1, %v2267_v56 }
 0x409   : > { %2896 = vmatpush1.msk.msra.mxu0 %vm513_vm0, %v1759_v9  ;;  %2423 = vmatprep.mubr.f32.mxu0 %v2988_v0 }
 0x40a   : > { %2898 = vmatprep.subr.msk.mxu0 %vm513_vm0, %v1771_v29 }
 0x40f   : > { %v2519_v12 = vpop.permute.xlu1 %2518 }
 0x410   : > { %2897 = vmatmul.mubr.msk.f32.vlgmr.msra.gmra.mrb[4].mxu0 %vm509_vm1, %v2350_v62 }
 0x411   : > { %2899 = vmatpush1.msk.msra.mxu0 %vm513_vm0, %v1770_v10  ;;  %2506 = vmatprep.mubr.f32.mxu0 %v2988_v0  ;;  %v2760_v0 = vpop.permute.xlu0 %2759 }
 0x418   : > { %2900 = vmatmul.mubr.msk.f32.vlgmr.msra.gmra.mrb[4].mxu0 %vm509_vm1, %v2433_v20 }
 0x4eb   : > { %v2508_v40 = vpop.f32.mrb[4].mxu0 }
 0x4ec   : > { %v2510_v13 = vpop.f32.mrb[5].mxu0  ;;  %v2521_v16 = vadd.f32 %v2519_v12, %v2508_v40 }
 0x4ed   : > { %v2522_v14 = vadd.f32 %v2519_v12, %v2510_v13 }
 0x4ef   : > { %2907 = vmatprep.subr.msk.mxu1 %vm513_vm0, %v2522_v14 }
 0x4f0   : > { %2908 = vmatpush1.msk.msra.mxu1 %vm513_vm0, %v2521_v16 }
 0x4f1   : > { %2909 = vmatmul.mubr.msk.f32.vlgmr.msra.gmra.mrb[2].mxu1 %vm509_vm1, %v2673_v18 }
 0x5c4   : > { %v2749_v19 = vpop.f32.mrb[2].mxu1 }
 0x5c5   : > { %v2762_v23 = vadd.f32 %v2760_v0, %v2749_v19  ;;  %v2751_v24 = vpop.f32.mrb[3].mxu1 }
 0x5c6   : > { %v2763_v25 = vadd.f32 %v2760_v0, %v2751_v24 }
 0x5c7   : > { %v2765_v26 = vadd.f32 %v2762_v23, %v3106_v3 }
 0x5c8   : > { %v2766_v27 = vadd.f32 %v2763_v25, %v3110_v4 }
 0x5ca   : > { %v2769_v28 = vcombine.low %v2765_v26, %v2766_v27 }
 0x5cc   : > { %2771 = vst [vmem:[%s494_s30] sm:$0xff] %v2769_v28 }
 0x5cd PF: > { %s25_s18 = sadd.s32 1, %s2986_s18  }
 0x5ce   : > { %p22_p4 = scmp.ge.s32.totalorder %s25_s18, 4  }
 0x5d0   :  { %24 = sbr.rel (!%p22_p4) target bundleno = 1 (0x1), region = 110 }

</bundles_post_ra>
